<compile_context>
chip_gen: v5e
topology: v5e:2x2
jax: 0.10.0
libtpu: 0.0.40
codegen_flags: <defaults>
</compile_context>

<pallas_src>
import functools

import jax
import jax.numpy as jnp
from jax.experimental import pallas as pl
from jax.experimental.pallas import tpu as pltpu

_LANE = 128


def _round_up(x, m):
    return ((x + m - 1) // m) * m


def _vmem_capacity_bytes():
    """Per-core VMEM capacity (128 MiB on v5e/v6e, 64 MiB per TC on v7x)."""
    try:
        cap = int(getattr(pltpu.get_tpu_info(), "vmem_capacity_bytes", 0))
        if cap > 0:
            return cap
    except Exception:
        pass
    return 128 * 1024 * 1024


def _choose_tiles(n, d, c_padded_min, w_itemsize):
    """Pick (tn, tc, c_padded, num_col_tiles, vmem_limit) from the VMEM budget."""
    cap = _vmem_capacity_bytes()
    budget = int(0.70 * cap)        # bytes available for tiles
    vmem_limit = int(0.85 * cap)    # compiler limit, kept consistent w/ budget

    # Column tile: keep the weight tile (worst case double-buffered) <= ~40%.
    w_tile_budget = int(0.40 * budget)
    tc = max((w_tile_budget // (2 * d * w_itemsize)) // _LANE * _LANE, _LANE)
    if tc >= c_padded_min:
        tc = c_padded = c_padded_min
    else:
        c_padded = _round_up(c_padded_min, tc)
    n_c = c_padded // tc

    # Row tile: everything that scales with tn, INCLUDING the in-kernel
    # (tn, tc) f32 matmul + gather/select temporaries.
    w_resident = 2 * d * tc * w_itemsize          # conservative: 2 buffers
    per_row = (2 * d * 4        # x tile (f32, double-buffered)
               + 2 * 4          # labels tile (int32, double-buffered)
               + 2 * tc * 4     # output tile (f32, double-buffered)
               + 2 * tc * 4     # wx + select temporaries (compiler VMEM)
               + d * 2          # in-kernel bf16 cast of x (worst case)
               + 16)            # acc scratch / norms
    avail = max(budget - w_resident, per_row * 8)
    tn = min(avail // per_row, 2048, n)
    if tn >= _LANE and n >= _LANE:
        tn = (tn // _LANE) * _LANE   # MXU consumes LHS in 128-row passes
    else:
        tn = max((tn // 8) * 8, min(n, 8))
    return int(max(tn, 1)), int(tc), int(c_padded), int(n_c), vmem_limit


def _weight_spec(d, tc, n_c):
    if n_c == 1:
        # Constant block index -> weight stays resident; a single buffer is
        # enough (the default second buffer would be pure VMEM waste).
        idx = lambda i, j: (0, 0)
        try:
            return pl.BlockSpec((d, tc), idx, pipeline_mode=pl.Buffered(1))
        except (TypeError, AttributeError):
            return pl.BlockSpec((d, tc), idx)   # fall back to default buffering
    return pl.BlockSpec((d, tc), lambda i, j: (0, j))


def _msce_virtual_kernel(labels_ref, x_ref, w_ref, out_ref, acc_ref, *,
                         scale, c_true, tc):
    """One (row tile, column tile) grid step.

    labels_ref : (TN, 1)  int32   (resident across column tiles)
    x_ref      : (TN, D)  f32     (resident across column tiles)
    w_ref      : (D, TC)  f32/bf16
    out_ref    : (TN, TC) f32     (lane-dense, written once per (i, j))
    acc_ref    : (TN, 1)  f32     scratch: running WX[i, y_i] across col tiles
    """
    j = pl.program_id(1)
    n_c = pl.num_programs(1)

    x = x_ref[...]
    # MXU matmul; x is cast to the weight dtype (no-op for f32; the bf16 path
    # runs at full MXU rate) while accumulation stays f32.
    wx = jnp.dot(x.astype(w_ref.dtype), w_ref[...],
                 preferred_element_type=jnp.float32)               # (TN, TC)

    col = jax.lax.broadcasted_iota(jnp.int32, wx.shape, 1) + j * tc
    labels = labels_ref[...]                                       # (TN, 1)

    @pl.when(j == 0)
    def _init():
        acc_ref[...] = jnp.zeros_like(acc_ref)

    # Gather WX[i, y_i] from the logits just computed (VPU select + XLU row
    # reduce) -- no second MXU contraction, no (N, D) temporaries.
    acc_ref[...] += jnp.sum(jnp.where(col == labels, wx, 0.0),
                            axis=1, keepdims=True)

    @pl.when(j == n_c - 1)
    def _finalize():
        # normalize(x_i).x_i = ||x_i||,  W[:, y_i].x_i = WX[i, y_i]
        #   => WX_virt[i] = scale * (||x_i|| - WX[i, y_i])
        xf = x.astype(jnp.float32)
        x_norm = jnp.sqrt(jnp.sum(xf * xf, axis=1, keepdims=True))
        wx_virt = jnp.clip((x_norm - acc_ref[...]) * scale, 1e-10, 15.0)
        # Blend the virtual logit into global column `c_true` with a full-width
        # select so the store stays one unmasked, lane-dense vst.
        out_ref[...] = jnp.where(col == c_true, wx_virt, wx).astype(out_ref.dtype)

    @pl.when(j != n_c - 1)
    def _store_plain():
        out_ref[...] = wx.astype(out_ref.dtype)


def _msce_plain_kernel(x_ref, w_ref, out_ref):
    out_ref[...] = jnp.dot(x_ref[...].astype(w_ref.dtype), w_ref[...],
                           preferred_element_type=jnp.float32
                           ).astype(out_ref.dtype)


def msce_resultant_virtual_softmax(inputs, weight, labels, mode, scale=0.5,
                                   mxu_dtype=jnp.float32):
    """Pallas TPU implementation of MSCEResultantVirtualSoftmax.forward.

    inputs : (N, D) f32, weight : (D, C) f32, labels : (N,) int, mode : bool.
    mxu_dtype=jnp.bfloat16 enables the low-precision MXU path (f32 accumulate).
    """
    inputs = jnp.asarray(inputs, jnp.float32)
    weight = jnp.asarray(weight)
    n, d = inputs.shape
    d2, c = weight.shape
    assert d == d2, (d, d2)

    out_cols = c + 1 if mode else c
    c_padded_min = _round_up(out_cols, _LANE)
    w_itemsize = jnp.dtype(mxu_dtype).itemsize
    tn, tc, c_padded, n_c, vmem_limit = _choose_tiles(n, d, c_padded_min,
                                                      w_itemsize)

    # Zero-pad classes to a lane-dense multiple of the column tile; padded
    # columns produce zero logits and are sliced off below.
    w_p = weight.astype(mxu_dtype)
    if c_padded != c:
        w_p = jnp.pad(w_p, ((0, 0), (0, c_padded - c)))

    grid = (pl.cdiv(n, tn), n_c)
    x_spec = pl.BlockSpec((tn, d), lambda i, j: (i, 0))
    w_spec = _weight_spec(d, tc, n_c)
    out_spec = pl.BlockSpec((tn, tc), lambda i, j: (i, j))
    out_shape = jax.ShapeDtypeStruct((n, c_padded), jnp.float32)

    cost = pl.CostEstimate(
        flops=2 * n * d * c_padded + (8 * n * c_padded if mode else 0),
        transcendentals=n if mode else 0,
        bytes_accessed=(4 * n * d + w_itemsize * d * c_padded
                        + 4 * n * c_padded + (4 * n if mode else 0)),
    )

    if not mode:
        out = pl.pallas_call(
            _msce_plain_kernel,
            out_shape=out_shape,
            grid=grid,
            in_specs=[x_spec, w_spec],
            out_specs=out_spec,
            compiler_params=pltpu.CompilerParams(
                dimension_semantics=("parallel", "parallel"),
                vmem_limit_bytes=vmem_limit),
            cost_estimate=cost,
        )(inputs, w_p)
        return out if c_padded == c else out[:, :c]

    labels2d = labels.astype(jnp.int32).reshape(n, 1)
    lbl_spec = pl.BlockSpec((tn, 1), lambda i, j: (i, 0))
    out = pl.pallas_call(
        functools.partial(_msce_virtual_kernel, scale=float(scale),
                          c_true=c, tc=tc),
        out_shape=out_shape,
        grid=grid,
        in_specs=[lbl_spec, x_spec, w_spec],
        out_specs=out_spec,
        scratch_shapes=[pltpu.VMEM((tn, 1), jnp.float32)],
        compiler_params=pltpu.CompilerParams(
            # Row tiles shard across TensorCores; the column axis carries the
            # WX[i, y_i] accumulator and must stay sequential.
            dimension_semantics=("parallel", "arbitrary"),
            vmem_limit_bytes=vmem_limit),
        cost_estimate=cost,
    )(labels2d, inputs, w_p)
    return out if c_padded == c + 1 else out[:, :c + 1]


def _reference(inputs, weight, labels, mode, scale=0.5):
    wx = inputs @ weight
    if not mode:
        return wx
    w_yi_t = weight[:, labels].T
    x_unit = inputs / jnp.maximum(
        jnp.linalg.norm(inputs, axis=1, keepdims=True), 1e-12)
    w_virt = (x_unit - w_yi_t) * scale
    wx_virt = jnp.clip(jnp.sum(w_virt * inputs, axis=1), 1e-10, 15.0)[:, None]
    return jnp.concatenate([wx, wx_virt], axis=1)


if __name__ == "__main__":
    key = jax.random.PRNGKey(0)
    k_proto, k_x, k_lbl = jax.random.split(key, 3)

    N, D, C = 8, 32, 16          # small shapes: batch=8, hidden=32, classes=16
    scale = 0.5

    prototypes = jax.random.normal(k_proto, (D, C), dtype=jnp.float32)
    inputs = jax.random.normal(k_x, (N, D), dtype=jnp.float32)
    inputs = inputs.at[0].set(0.0)       # exercise the zero-norm row path
    labels = jax.random.randint(k_lbl, (N,), 0, C, dtype=jnp.int32)

    # mode=True (training): fused virtual-logit column, f32 MXU path.
    out_train = jax.block_until_ready(
        msce_resultant_virtual_softmax(inputs, prototypes, labels, mode=True,
                                       scale=scale))
    ref_train = _reference(inputs, prototypes, labels, True, scale)
    assert out_train.shape == (N, C + 1)
    assert jnp.allclose(out_train, ref_train, atol=1e-5, rtol=1e-5)

    # mode=False (eval): plain logits.
    out_eval = jax.block_until_ready(
        msce_resultant_virtual_softmax(inputs, prototypes, labels, mode=False,
                                       scale=scale))
    ref_eval = _reference(inputs, prototypes, labels, False, scale)
    assert out_eval.shape == (N, C)
    assert jnp.allclose(out_eval, ref_eval, atol=1e-5, rtol=1e-5)

    # Optional bf16 MXU path (f32 accumulate): looser tolerance by construction.
    out_bf16 = jax.block_until_ready(
        msce_resultant_virtual_softmax(inputs, prototypes, labels, mode=True,
                                       scale=scale, mxu_dtype=jnp.bfloat16))
    assert out_bf16.shape == (N, C + 1)
    assert jnp.allclose(out_bf16, ref_train, atol=0.25, rtol=0.05)

    print("KERNEL_OK")
</pallas_src>

<mosaic_0001>
module attributes {stable_mosaic.version = 11 : i64} {
  func.func @_msce_virtual_kernel(%arg0: i32, %arg1: i32, %arg2: memref<8x1xi32, #tpu.memory_space<vmem>>, %arg3: memref<8x32xf32, #tpu.memory_space<vmem>>, %arg4: memref<32x128xf32, #tpu.memory_space<vmem>>, %arg5: memref<8x128xf32, #tpu.memory_space<vmem>>, %arg6: memref<8x1xf32, #tpu.memory_space<vmem>>) attributes {dimension_semantics = [#tpu.dimension_semantics<parallel>, #tpu.dimension_semantics<arbitrary>], iteration_bounds = array<i64: 1, 1>, scalar_prefetch = 0 : i64, scratch_operands = 1 : i64, tpu.core_type = #tpu.core_type<tc>, window_params = [{transform_indices = @transform_0, window_bounds = array<i64: 8, 1>}, {transform_indices = @transform_1, window_bounds = array<i64: 8, 32>}, {pipeline_mode = #tpu.pipeline_mode<synchronous>, transform_indices = @transform_2, window_bounds = array<i64: 32, 128>}, {transform_indices = @transform_3, window_bounds = array<i64: 8, 128>}]} {
    %c0 = arith.constant 0 : index
    %c0_0 = arith.constant 0 : index
    %0 = vector.load %arg3[%c0, %c0_0] : memref<8x32xf32, #tpu.memory_space<vmem>>, vector<8x32xf32>
    %c0_1 = arith.constant 0 : index
    %c0_2 = arith.constant 0 : index
    %1 = vector.load %arg4[%c0_1, %c0_2] : memref<32x128xf32, #tpu.memory_space<vmem>>, vector<32x128xf32>
    %cst = arith.constant dense<0.000000e+00> : vector<8x128xf32>
    %2 = tpu.matmul %0, %1, %cst {dimension_numbers = #tpu.dot_dimension_numbers<[1], [0], [0], [1], [0, 0, 1, 1], [], []>} : vector<8x32xf32>, vector<32x128xf32>, vector<8x128xf32> -> vector<8x128xf32>
    %3 = tpu.iota {dimensions = array<i32: 1>} : vector<8x128xi32>
    %c128_i32 = arith.constant 128 : i32
    %4 = arith.muli %arg1, %c128_i32 : i32
    %5 = vector.broadcast %4 : i32 to vector<8x128xi32>
    %6 = arith.addi %3, %5 : vector<8x128xi32>
    %c0_3 = arith.constant 0 : index
    %c0_4 = arith.constant 0 : index
    %7 = vector.load %arg2[%c0_3, %c0_4] : memref<8x1xi32, #tpu.memory_space<vmem>>, vector<8x1xi32>
    %c0_i32 = arith.constant 0 : i32
    %8 = arith.cmpi eq, %arg1, %c0_i32 : i32
    %9 = arith.extui %8 : i1 to i32
    %c0_i32_5 = arith.constant 0 : i32
    %10 = arith.cmpi ne, %9, %c0_i32_5 : i32
    scf.if %10 {
      %cst_16 = arith.constant 0.000000e+00 : f32
      %26 = vector.broadcast %cst_16 : f32 to vector<8x1xf32>
      %c0_17 = arith.constant 0 : index
      %c0_18 = arith.constant 0 : index
      %27 = vector.load %arg6[%c0_17, %c0_18] : memref<8x1xf32, #tpu.memory_space<vmem>>, vector<8x1xf32>
      tpu.vector_store %arg6[%c0_17, %c0_18], %26 {strides = array<i32>} : memref<8x1xf32, #tpu.memory_space<vmem>>, vector<8x1xf32>,
    } else {
    }
    %c0_6 = arith.constant 0 : index
    %c0_7 = arith.constant 0 : index
    %11 = vector.load %arg6[%c0_6, %c0_7] : memref<8x1xf32, #tpu.memory_space<vmem>>, vector<8x1xf32>
    %12 = vector.broadcast %7 : vector<8x1xi32> to vector<8x128xi32>
    %13 = arith.cmpi eq, %6, %12 : vector<8x128xi32>
    %cst_8 = arith.constant 0.000000e+00 : f32
    %14 = vector.broadcast %cst_8 : f32 to vector<8x128xf32>
    %15 = arith.select %13, %2, %14 : vector<8x128xi1>, vector<8x128xf32>
    %cst_9 = arith.constant dense<0.000000e+00> : vector<8xf32>
    %16 = vector.multi_reduction <add>, %15, %cst_9 [1] : vector<8x128xf32> to vector<8xf32>
    %17 = vector.shape_cast %16 : vector<8xf32> to vector<8x1xf32>
    %18 = arith.addf %11, %17 : vector<8x1xf32>
    %c0_10 = arith.constant 0 : index
    %c0_11 = arith.constant 0 : index
    %19 = vector.load %arg6[%c0_10, %c0_11] : memref<8x1xf32, #tpu.memory_space<vmem>>, vector<8x1xf32>
    tpu.vector_store %arg6[%c0_10, %c0_11], %18 {strides = array<i32>} : memref<8x1xf32, #tpu.memory_space<vmem>>, vector<8x1xf32>,
    %c0_i32_12 = arith.constant 0 : i32
    %20 = arith.cmpi eq, %arg1, %c0_i32_12 : i32
    %21 = arith.extui %20 : i1 to i32
    %c0_i32_13 = arith.constant 0 : i32
    %22 = arith.cmpi ne, %21, %c0_i32_13 : i32
    scf.if %22 {
      %26 = arith.mulf %0, %0 : vector<8x32xf32>
      %cst_16 = arith.constant dense<0.000000e+00> : vector<8xf32>
      %27 = vector.multi_reduction <add>, %26, %cst_16 [1] : vector<8x32xf32> to vector<8xf32>
      %28 = vector.shape_cast %27 : vector<8xf32> to vector<8x1xf32>
      %29 = math.sqrt %28 : vector<8x1xf32>
      %c0_17 = arith.constant 0 : index
      %c0_18 = arith.constant 0 : index
      %30 = vector.load %arg6[%c0_17, %c0_18] : memref<8x1xf32, #tpu.memory_space<vmem>>, vector<8x1xf32>
      %31 = arith.subf %29, %30 : vector<8x1xf32>
      %cst_19 = arith.constant 5.000000e-01 : f32
      %32 = vector.broadcast %cst_19 : f32 to vector<8x1xf32>
      %33 = arith.mulf %31, %32 : vector<8x1xf32>
      %cst_20 = arith.constant 1.000000e-10 : f32
      %cst_21 = arith.constant 1.500000e+01 : f32
      %34 = vector.broadcast %cst_20 : f32 to vector<8x1xf32>
      %35 = arith.maximumf %34, %33 : vector<8x1xf32>
      %36 = vector.broadcast %cst_21 : f32 to vector<8x1xf32>
      %37 = arith.minimumf %36, %35 : vector<8x1xf32>
      %c16_i32 = arith.constant 16 : i32
      %38 = vector.broadcast %c16_i32 : i32 to vector<8x128xi32>
      %39 = arith.cmpi eq, %6, %38 : vector<8x128xi32>
      %40 = vector.shape_cast %37 : vector<8x1xf32> to vector<8x1xf32>
      %41 = vector.broadcast %40 : vector<8x1xf32> to vector<8x128xf32>
      %42 = arith.select %39, %41, %2 : vector<8x128xi1>, vector<8x128xf32>
      %c0_22 = arith.constant 0 : index
      %c0_23 = arith.constant 0 : index
      %43 = vector.load %arg5[%c0_22, %c0_23] : memref<8x128xf32, #tpu.memory_space<vmem>>, vector<8x128xf32>
      tpu.vector_store %arg5[%c0_22, %c0_23], %42 {strides = array<i32>} : memref<8x128xf32, #tpu.memory_space<vmem>>, vector<8x128xf32>,
    } else {
    }
    %c0_i32_14 = arith.constant 0 : i32
    %23 = arith.cmpi ne, %arg1, %c0_i32_14 : i32
    %24 = arith.extui %23 : i1 to i32
    %c0_i32_15 = arith.constant 0 : i32
    %25 = arith.cmpi ne, %24, %c0_i32_15 : i32
    scf.if %25 {
      %c0_16 = arith.constant 0 : index
      %c0_17 = arith.constant 0 : index
      %26 = vector.load %arg5[%c0_16, %c0_17] : memref<8x128xf32, #tpu.memory_space<vmem>>, vector<8x128xf32>
      tpu.vector_store %arg5[%c0_16, %c0_17], %2 {strides = array<i32>} : memref<8x128xf32, #tpu.memory_space<vmem>>, vector<8x128xf32>,
    } else {
    }
    return
  }
  func.func @transform_0(%arg0: i32, %arg1: i32) -> (i32, i32) {
    %c0_i32 = arith.constant 0 : i32
    %c0_i32_0 = arith.constant 0 : i32
    return %arg0, %c0_i32 : i32, i32
  }
  func.func @transform_1(%arg0: i32, %arg1: i32) -> (i32, i32) {
    %c0_i32 = arith.constant 0 : i32
    %c0_i32_0 = arith.constant 0 : i32
    return %arg0, %c0_i32 : i32, i32
  }
  func.func @transform_2(%arg0: i32, %arg1: i32) -> (i32, i32) {
    %c0_i32 = arith.constant 0 : i32
    %c0_i32_0 = arith.constant 0 : i32
    %c0_i32_1 = arith.constant 0 : i32
    return %c0_i32, %c0_i32_0 : i32, i32
  }
  func.func @transform_3(%arg0: i32, %arg1: i32) -> (i32, i32) {
    %c0_i32 = arith.constant 0 : i32
    return %arg0, %arg1 : i32, i32
  }
}

</mosaic_0001>

<bundles_post_ra>
// kernel: tpu_custom_call.1
= control target key start
LH: loop header
LB: loop body
LE: loop exit
PB: predicated region body
PF: predicated region fallthrough
CT: control target
= control target key end

     0   :  { %8 = vsyncpa [#allocation4], 0  ;;  %s238_s0 = inlined_call_operand.vmem [shape: s32[8,1], index: 0, kind: input, shape index: {}]   ;;  %s239_s1 = inlined_call_operand.vmem [shape: f32[8,32], index: 1, kind: input, shape index: {}]   ;;  %s240_s2 = inlined_call_operand.hbm [shape: f32[32,128], index: 2, kind: input, shape index: {}]   ;;  %s241_s3 = inlined_call_operand.hbm [shape: f32[8,128], index: 3, kind: output, shape index: {}]  }
   0x1   :  { %9 = vsyncpa [#allocation5], 0  ;;  %s18_s14 = sshll.u32 %s240_s2, 4  ;;  %s200_s15 = smov [#allocation3]   ;;  %s19_s14 = int_to_ptr.hbm [resolvable:$true] %s18_s14 }
   0x2   :  { %s20_s16 = sshll.u32 %s200_s15, 4  ;;  %s201_s17 = smov 128   ;;  %s21_s16 = int_to_ptr.vmem [resolvable:$true] %s20_s16 }
   0x3   :  { %s202_s18 = smov 8  }
   0x4   :  { %26 = dma.hbm_to_vmem [thread:$0]  %s19_s14, 512, %s21_s16, [#allocation4], %s201_s17, %s201_s17, %s202_s18  }
   0x5   :  { %196 = dma.done.wait [#allocation4], 512  }
   0x6   :  { %197 = vsyncadd [#allocation4], 4294966784  ;;  %v203_v0 = vmov 0   ;;  %v35_v1 = vld [vmem:[#allocation3 + $0x18] sm:$0xff]  ;;  %v34_v2 = vld [vmem:[#allocation3 + $0x10] sm:$0xff]  ;;  %vm36_vm0 = vcmask 261120   ;;  %v60_v9 = vlaneseq }
   0x7   :  { %144 = vset.pattern.permute.xlu0 %v203_v0  ;;  %145 = vset.pattern.permute.xlu1 %v203_v0  ;;  %v65_v3 = vld [vmem:[%s238_s0] sm:$0xff]  ;;  %v33_v4 = vld [vmem:[#allocation3 + $0x8] sm:$0xff]  ;;  %v32_v5 = vld [vmem:[#allocation3] sm:$0xff]  ;;  %vm70_vm2 = vcmask 7168   ;;  %v204_v14 = vmov 0.0   ;;  %s205_s0 = smov [#allocation6]  }
   0x8   :  { %52 = vmatpush.msra.mxu0 %v35_v1  ;;  %74 = vperm.xlu0 %144, %v65_v3   ;;  %v31_v6 = vld [vmem:[%s239_s1] sm:$0xff]  ;;  %v61_v10 = vand.u32 127, %v60_v9  ;;  %71 = vst.msk [vmem:[#allocation2] sm:$0xff] %vm70_vm2, %v204_v14  ;;  %s125_s1 = sshll.u32 %s205_s0, 4  ;;  %s127_s24 = sshll.u32 %s241_s3, 4  ;;  %s126_s1 = int_to_ptr.vmem [resolvable:$true] %s125_s1  ;;  %s128_s24 = int_to_ptr.hbm [resolvable:$true] %s127_s24 }
   0x9   :  { %v86_v7 = vmul.f32 %v31_v6, %v31_v6 }
   0xa   :  { %53 = vmatpush.msra.mxu0 %v34_v2  ;;  %vm107_vm5 = vcmp.eq.s32.totalorder %v61_v10, 16 }
   0xb   :  { %v87_v8 = vsel %vm36_vm0, %v86_v7, 0.0 }
   0xc   :  { %54 = vmatpush.msra.mxu0 %v33_v4 }
   0xe   :  { %55 = vmatpush.msra.mxu0 %v32_v5 }
   0xf   :  { %137 = vmatmul.msk.f32.vlgmr.msra.gmra.mxu0 %vm36_vm0, %v31_v6  ;;  %v72_v21 = vld [vmem:[#allocation2] sm:$0xff] }
  0x32   :  { %88 = vadd.xlane.f32.xlu0 %v87_v8 }
  0x7a   :  { %v75_v11 = vpop.permute.xlu0 %74 }
  0x7b   :  { %vm76_vm1 = vcmp.eq.s32.totalorder %v61_v10, %v75_v11 }
  0x8c   :  { %v57_v12 = vpop.f32.mrf.mxu0 }
  0x8d   :  { %v77_v13 = vsel %vm76_vm1, %v57_v12, 0.0 }
  0x8e   :  { %78 = vadd.xlane.f32.xlu1 %v77_v13 }
  0xa5   :  { %v89_v15 = vpop.xlane.xlu0 %88 }
  0xa6   :  { %146 = vrsqrt.f32 %v89_v15  ;;  %vm97_vm3 = vcmp.eq.f32.partialorder %v89_v15, inf  ;;  %v100_v26 = vand.u32 2147483648, %v89_v15  ;;  %vm99_vm4 = vcmp.eq.f32.partialorder %v89_v15, 0.0 }
  0xac   :  { %v147_v16 = vpop.eup %146 }
  0xad   :  { %v91_v17 = vmul.f32 %v147_v16, %v89_v15 }
  0xaf   :  { %v92_v18 = vmul.f32 %v147_v16, %v91_v17 }
  0xb1   :  { %v93_v19 = vmul.f32 0.5, %v92_v18 }
  0xb3   :  { %v94_v20 = vsub.f32 1.5, %v93_v19 }
  0xb5   :  { %v95_v22 = vmul.f32 %v147_v16, %v94_v20 }
  0xb7   :  { %v96_v25 = vmul.f32 %v95_v22, %v89_v15 }
  0xb9   :  { %v98_v27 = vsel %vm97_vm3, %v89_v15, %v96_v25 }
  0xba   :  { %v101_v28 = vsel %vm99_vm4, %v100_v26, %v98_v27 }
 0x101   :  { %v79_v23 = vpop.xlane.xlu1 %78 }
 0x102   :  { %v80_v24 = vadd.f32 %v79_v23, %v72_v21 }
 0x104   :  { %82 = vst.msk [vmem:[#allocation2] sm:$0xff] %vm70_vm2, %v80_v24 }
 0x10b   :  { %v102_v29 = vld [vmem:[#allocation2] sm:$0xff] }
 0x10c   :  { %v103_v30 = vsub.f32 %v101_v28, %v102_v29 }
 0x10e   :  { %v104_v31 = vmul.f32 0.5, %v103_v30 }
 0x110   :  { %v105_v32 = vmax.f32 %v104_v31, 1e-10 }
 0x112   :  { %v106_v33 = vmin.f32 %v105_v32, 15.0 }
 0x114   :  { %110 = vperm.xlu1 %145, %v106_v33  }
 0x186   :  { %v111_v34 = vpop.permute.xlu1 %110 }
 0x187   :  { %v113_v35 = vsel %vm107_vm5, %v111_v34, %v57_v12 }
 0x188   :  { %114 = vst [vmem:[#allocation6] sm:$0xff] %v113_v35 }
 0x189   :  { %130 = dma.vmem_to_hbm [thread:$0]  %s126_s1, 128, %s128_s24, [#allocation5]  }
 0x18a   :  { %198 = dma.done.wait [#allocation5], 128  }
 0x18b   :  { %199 = vsyncadd [#allocation5], 4294967168 }
 0x18c   :  { %135 = vsyncpa [#allocation4], 1 }
 0x18d   :  { %136 = vsyncpa [#allocation5], 1 }

</bundles_post_ra>
